<compile_context>
chip_gen: v7x
topology: tpu7x:2x2x1
jax: 0.10.0
libtpu: 0.0.40
codegen_flags: <defaults>
</compile_context>

<pallas_src>
import math

import jax
import jax.numpy as jnp
from jax.experimental import pallas as pl
from jax.experimental.pallas import tpu as pltpu

D_MODEL = 32
HEADS = 4
D_K = D_MODEL // HEADS
EPS = 1e-6
NEG_INF = -1000000000.0

# Max batch elements folded into one grid step. At TB=256, S=8, D=32 (f32) one x block is
# 256 KiB; with double-buffered in+out this stays well under the 32 MiB scoped VMEM limit
# (and under v7x's 64 MiB physical VMEM).
TB_CAP = 256


def _norm(z, alpha, bias):
    # torch Norm: alpha * (x - mean) / (std + eps) + bias, std is unbiased (divide by N-1)
    mu = jnp.mean(z, axis=-1, keepdims=True)
    c = z - mu
    var = jnp.sum(c * c, axis=-1, keepdims=True) * (1.0 / (z.shape[-1] - 1))
    inv = pl.reciprocal(jnp.sqrt(var) + EPS, approx=False)  # exact reciprocal on EUP
    return alpha * (c * inv) + bias


def encoder_layer_kernel(x_ref, mask_ref, wqkv_ref, bqkv_ref,
                         a1_ref, b1_ref, a2_ref, b2_ref, out_ref):
    TB, S, D = x_ref.shape
    x = x_ref[...]                                        # (TB, S, D)

    # --- Norm 1 ---
    x2 = _norm(x, a1_ref[...], b1_ref[...])               # (TB, S, D)

    # --- fused QKV projection: single MXU matmul (TB*S, D) @ (D, 3D) ---
    x2f = x2.reshape(TB * S, D)
    qkv = jnp.dot(x2f, wqkv_ref[...],
                  preferred_element_type=jnp.float32) + bqkv_ref[...]   # (TB*S, 3D)
    qkv = qkv.reshape(TB, S, 3 * D)
    q3 = qkv[..., 0 * D:1 * D] * (1.0 / math.sqrt(D_K))   # fold 1/sqrt(d_k) into q once
    k3 = qkv[..., 1 * D:2 * D]
    v3 = qkv[..., 2 * D:3 * D]

    # --- mask compare hoisted out of the head loop; broadcasts over heads & query rows ---
    mzero = mask_ref[...] == 0.0                          # (TB, 1, S)

    # --- per-head attention, batched over all TB batch elements at once ---
    head_outs = []
    for h in range(HEADS):                                # static unroll, H is tiny
        sl = slice(h * D_K, (h + 1) * D_K)
        qh, kh, vh = q3[..., sl], k3[..., sl], v3[..., sl]        # (TB, S, D_K)
        scores = jnp.einsum('bqd,bkd->bqk', qh, kh,
                            preferred_element_type=jnp.float32)   # (TB, S, S)
        scores = jnp.where(mzero, NEG_INF, scores)        # exact masked_fill semantics
        smax = jnp.max(scores, axis=-1, keepdims=True)
        e = jnp.exp(scores - smax)
        inv_den = pl.reciprocal(jnp.sum(e, axis=-1, keepdims=True), approx=False)
        p = e * inv_den
        head_outs.append(jnp.einsum('bqk,bkd->bqd', p, vh,
                                    preferred_element_type=jnp.float32))  # (TB, S, D_K)
    attn = jnp.concatenate(head_outs, axis=-1)            # (TB, S, D) — head concat

    # --- residual + Norm 2 ---
    out = _norm(x + attn, a2_ref[...], b2_ref[...])
    out_ref[...] = out.astype(out_ref.dtype)


def _pick_tb(B, cap=TB_CAP):
    """Largest divisor of B that is <= cap (keeps full blocks, no padding logic)."""
    tb = min(B, cap)
    while B % tb != 0:
        tb -= 1
    return tb


def encoder_layer(x, mask, params):
    B, S, D = x.shape
    (wq, bq, wk, bk, wv, bv, a1, b1, a2, b2) = params

    # Pack QKV weights / biases once wrapper-side -> one fused matmul in-kernel.
    wqkv = jnp.concatenate([wq, wk, wv], axis=1)          # (D, 3D)
    bqkv = jnp.concatenate([bq, bk, bv], axis=1)          # (1, 3D)

    TB = _pick_tb(B)
    grid = (B // TB,)

    wqkv_spec = pl.BlockSpec((D, 3 * D), lambda i: (0, 0))
    bqkv_spec = pl.BlockSpec((1, 3 * D), lambda i: (0, 0))
    vec_spec = pl.BlockSpec((1, D), lambda i: (0, 0))

    return pl.pallas_call(
        encoder_layer_kernel,
        out_shape=jax.ShapeDtypeStruct((B, S, D), x.dtype),
        grid=grid,
        in_specs=[
            pl.BlockSpec((TB, S, D), lambda i: (i, 0, 0)),   # x: TB batch elems / step
            pl.BlockSpec((TB, 1, S), lambda i: (i, 0, 0)),   # mask
            wqkv_spec, bqkv_spec,                            # fused Wqkv, bqkv
            vec_spec, vec_spec,                              # alpha1, bias1
            vec_spec, vec_spec,                              # alpha2, bias2
        ],
        out_specs=pl.BlockSpec((TB, S, D), lambda i: (i, 0, 0)),
        compiler_params=pltpu.CompilerParams(
            dimension_semantics=("parallel",),
            vmem_limit_bytes=32 * 1024 * 1024),
    )(x, mask, wqkv, bqkv, a1, b1, a2, b2)


def ref_forward(x, mask, params):
    """Pure-JAX reference mirroring the PyTorch module (eval mode)."""
    (wq, bq, wk, bk, wv, bv, a1, b1, a2, b2) = params
    B, S, D = x.shape

    def norm(z, alpha, bias):
        mu = z.mean(-1, keepdims=True)
        std = jnp.sqrt(((z - mu) ** 2).sum(-1, keepdims=True) / (D - 1))
        return alpha * (z - mu) / (std + EPS) + bias

    x2 = norm(x, a1[0], b1[0])
    q = (x2 @ wq + bq[0]).reshape(B, S, HEADS, D_K).transpose(0, 2, 1, 3)
    k = (x2 @ wk + bk[0]).reshape(B, S, HEADS, D_K).transpose(0, 2, 1, 3)
    v = (x2 @ wv + bv[0]).reshape(B, S, HEADS, D_K).transpose(0, 2, 1, 3)
    scores = jnp.einsum("bhqd,bhkd->bhqk", q, k) / math.sqrt(D_K)
    scores = jnp.where(mask[:, None, :, :] == 0.0, NEG_INF, scores)
    p = jax.nn.softmax(scores, axis=-1)
    o = jnp.einsum("bhqk,bhkd->bhqd", p, v).transpose(0, 2, 1, 3).reshape(B, S, D)
    xr = x + o
    return norm(xr, a2[0], b2[0])


if __name__ == "__main__":
    B, S, D = 2, 8, D_MODEL

    key = jax.random.PRNGKey(0)
    keys = jax.random.split(key, 8)

    x = jax.random.normal(keys[0], (B, S, D), dtype=jnp.float32)

    # mask: (B, 1, S) — ones with some padding zeros on batch 1
    mask = jnp.ones((B, 1, S), dtype=jnp.float32)
    mask = mask.at[1, 0, 6:].set(0.0)

    # deterministic synthetic parameters (weights stored as (in, out): y = x @ W + b)
    wq = 0.05 * jax.random.normal(keys[1], (D, D), dtype=jnp.float32)
    wk = 0.05 * jax.random.normal(keys[2], (D, D), dtype=jnp.float32)
    wv = 0.05 * jax.random.normal(keys[3], (D, D), dtype=jnp.float32)
    bq = 0.05 * jax.random.normal(keys[4], (1, D), dtype=jnp.float32)
    bk = 0.05 * jax.random.normal(keys[5], (1, D), dtype=jnp.float32)
    bv = 0.05 * jax.random.normal(keys[6], (1, D), dtype=jnp.float32)
    # Norm params as in module __init__: alpha = ones, bias = zeros
    a1 = jnp.ones((1, D), dtype=jnp.float32)
    b1 = jnp.zeros((1, D), dtype=jnp.float32)
    a2 = jnp.ones((1, D), dtype=jnp.float32)
    b2 = jnp.zeros((1, D), dtype=jnp.float32)

    params = (wq, bq, wk, bk, wv, bv, a1, b1, a2, b2)

    out = encoder_layer(x, mask, params)
    out = jax.block_until_ready(out)

    ref = jax.block_until_ready(ref_forward(x, mask, params))
    assert out.shape == (B, S, D)
    assert jnp.allclose(out, ref, atol=1e-4, rtol=1e-4), "mismatch vs JAX reference"

    print("KERNEL_OK")
</pallas_src>

<mosaic_0001>
module attributes {stable_mosaic.version = 11 : i64} {
  func.func @encoder_layer_kernel(%arg0: i32, %arg1: memref<2x8x32xf32, #tpu.memory_space<vmem>>, %arg2: memref<2x1x8xf32, #tpu.memory_space<vmem>>, %arg3: memref<32x96xf32, #tpu.memory_space<vmem>>, %arg4: memref<1x96xf32, #tpu.memory_space<vmem>>, %arg5: memref<1x32xf32, #tpu.memory_space<vmem>>, %arg6: memref<1x32xf32, #tpu.memory_space<vmem>>, %arg7: memref<1x32xf32, #tpu.memory_space<vmem>>, %arg8: memref<1x32xf32, #tpu.memory_space<vmem>>, %arg9: memref<2x8x32xf32, #tpu.memory_space<vmem>>) attributes {dimension_semantics = [#tpu.dimension_semantics<parallel>], iteration_bounds = array<i64: 1>, scalar_prefetch = 0 : i64, scratch_operands = 0 : i64, tpu.core_type = #tpu.core_type<tc>, window_params = [{transform_indices = @transform_0, window_bounds = array<i64: 2, 8, 32>}, {transform_indices = @transform_1, window_bounds = array<i64: 2, 1, 8>}, {pipeline_mode = #tpu.pipeline_mode<synchronous>, transform_indices = @transform_2, window_bounds = array<i64: 32, 96>}, {pipeline_mode = #tpu.pipeline_mode<synchronous>, transform_indices = @transform_3, window_bounds = array<i64: 1, 96>}, {pipeline_mode = #tpu.pipeline_mode<synchronous>, transform_indices = @transform_4, window_bounds = array<i64: 1, 32>}, {pipeline_mode = #tpu.pipeline_mode<synchronous>, transform_indices = @transform_5, window_bounds = array<i64: 1, 32>}, {pipeline_mode = #tpu.pipeline_mode<synchronous>, transform_indices = @transform_6, window_bounds = array<i64: 1, 32>}, {pipeline_mode = #tpu.pipeline_mode<synchronous>, transform_indices = @transform_7, window_bounds = array<i64: 1, 32>}, {transform_indices = @transform_8, window_bounds = array<i64: 2, 8, 32>}]} {
    %c0 = arith.constant 0 : index
    %c0_0 = arith.constant 0 : index
    %c0_1 = arith.constant 0 : index
    %0 = vector.load %arg1[%c0, %c0_0, %c0_1] : memref<2x8x32xf32, #tpu.memory_space<vmem>>, vector<2x8x32xf32>
    %c0_2 = arith.constant 0 : index
    %c0_3 = arith.constant 0 : index
    %1 = vector.load %arg5[%c0_2, %c0_3] : memref<1x32xf32, #tpu.memory_space<vmem>>, vector<1x32xf32>
    %c0_4 = arith.constant 0 : index
    %c0_5 = arith.constant 0 : index
    %2 = vector.load %arg6[%c0_4, %c0_5] : memref<1x32xf32, #tpu.memory_space<vmem>>, vector<1x32xf32>
    %cst = arith.constant dense<0.000000e+00> : vector<2x8xf32>
    %3 = vector.multi_reduction <add>, %0, %cst [2] : vector<2x8x32xf32> to vector<2x8xf32>
    %4 = vector.shape_cast %3 : vector<2x8xf32> to vector<2x8x1xf32>
    %cst_6 = arith.constant 3.200000e+01 : f32
    %5 = vector.broadcast %cst_6 : f32 to vector<2x8x1xf32>
    %6 = arith.divf %4, %5 : vector<2x8x1xf32>
    %7 = vector.broadcast %6 : vector<2x8x1xf32> to vector<2x8x32xf32>
    %8 = arith.subf %0, %7 : vector<2x8x32xf32>
    %9 = arith.mulf %8, %8 : vector<2x8x32xf32>
    %cst_7 = arith.constant dense<0.000000e+00> : vector<2x8xf32>
    %10 = vector.multi_reduction <add>, %9, %cst_7 [2] : vector<2x8x32xf32> to vector<2x8xf32>
    %11 = vector.shape_cast %10 : vector<2x8xf32> to vector<2x8x1xf32>
    %cst_8 = arith.constant 0.0322580636 : f32
    %12 = vector.broadcast %cst_8 : f32 to vector<2x8x1xf32>
    %13 = arith.mulf %11, %12 : vector<2x8x1xf32>
    %14 = math.sqrt %13 : vector<2x8x1xf32>
    %cst_9 = arith.constant 9.99999997E-7 : f32
    %15 = vector.broadcast %cst_9 : f32 to vector<2x8x1xf32>
    %16 = arith.addf %14, %15 : vector<2x8x1xf32>
    %17 = tpu.reciprocal %16 : vector<2x8x1xf32> -> vector<2x8x1xf32>
    %18 = vector.broadcast %17 : vector<2x8x1xf32> to vector<2x8x32xf32>
    %19 = arith.mulf %8, %18 : vector<2x8x32xf32>
    %20 = vector.shape_cast %1 : vector<1x32xf32> to vector<1x1x32xf32>
    %21 = vector.broadcast %20 : vector<1x1x32xf32> to vector<2x8x32xf32>
    %22 = arith.mulf %21, %19 : vector<2x8x32xf32>
    %23 = vector.shape_cast %2 : vector<1x32xf32> to vector<1x1x32xf32>
    %24 = vector.broadcast %23 : vector<1x1x32xf32> to vector<2x8x32xf32>
    %25 = arith.addf %22, %24 : vector<2x8x32xf32>
    %26 = vector.shape_cast %25 : vector<2x8x32xf32> to vector<16x32xf32>
    %c0_10 = arith.constant 0 : index
    %c0_11 = arith.constant 0 : index
    %27 = vector.load %arg3[%c0_10, %c0_11] : memref<32x96xf32, #tpu.memory_space<vmem>>, vector<32x96xf32>
    %cst_12 = arith.constant dense<0.000000e+00> : vector<16x96xf32>
    %28 = tpu.matmul %26, %27, %cst_12 {dimension_numbers = #tpu.dot_dimension_numbers<[1], [0], [0], [1], [0, 0, 1, 1], [], []>} : vector<16x32xf32>, vector<32x96xf32>, vector<16x96xf32> -> vector<16x96xf32>
    %c0_13 = arith.constant 0 : index
    %c0_14 = arith.constant 0 : index
    %29 = vector.load %arg4[%c0_13, %c0_14] : memref<1x96xf32, #tpu.memory_space<vmem>>, vector<1x96xf32>
    %30 = vector.broadcast %29 : vector<1x96xf32> to vector<16x96xf32>
    %31 = arith.addf %28, %30 : vector<16x96xf32>
    %32 = vector.shape_cast %31 : vector<16x96xf32> to vector<2x8x96xf32>
    %33 = vector.extract_strided_slice %32 {offsets = [0, 0, 0], sizes = [2, 8, 32], strides = [1, 1, 1]} : vector<2x8x96xf32> to vector<2x8x32xf32>
    %cst_15 = arith.constant 0.353553385 : f32
    %34 = vector.broadcast %cst_15 : f32 to vector<2x8x32xf32>
    %35 = arith.mulf %33, %34 : vector<2x8x32xf32>
    %36 = vector.extract_strided_slice %32 {offsets = [0, 0, 32], sizes = [2, 8, 32], strides = [1, 1, 1]} : vector<2x8x96xf32> to vector<2x8x32xf32>
    %37 = vector.extract_strided_slice %32 {offsets = [0, 0, 64], sizes = [2, 8, 32], strides = [1, 1, 1]} : vector<2x8x96xf32> to vector<2x8x32xf32>
    %c0_16 = arith.constant 0 : index
    %c0_17 = arith.constant 0 : index
    %c0_18 = arith.constant 0 : index
    %38 = vector.load %arg2[%c0_16, %c0_17, %c0_18] : memref<2x1x8xf32, #tpu.memory_space<vmem>>, vector<2x1x8xf32>
    %cst_19 = arith.constant 0.000000e+00 : f32
    %39 = vector.broadcast %cst_19 : f32 to vector<2x1x8xf32>
    %40 = arith.cmpf oeq, %38, %39 : vector<2x1x8xf32>
    %41 = vector.extract_strided_slice %35 {offsets = [0, 0, 0], sizes = [2, 8, 8], strides = [1, 1, 1]} : vector<2x8x32xf32> to vector<2x8x8xf32>
    %42 = vector.extract_strided_slice %36 {offsets = [0, 0, 0], sizes = [2, 8, 8], strides = [1, 1, 1]} : vector<2x8x32xf32> to vector<2x8x8xf32>
    %43 = vector.extract_strided_slice %37 {offsets = [0, 0, 0], sizes = [2, 8, 8], strides = [1, 1, 1]} : vector<2x8x32xf32> to vector<2x8x8xf32>
    "tpu.trace_start"() <{level = 10 : i32, message = "bqd,bkd->bqk"}> : () -> ()
    %cst_20 = arith.constant dense<0.000000e+00> : vector<2x8x8xf32>
    %44 = tpu.matmul %41, %42, %cst_20 {dimension_numbers = #tpu.dot_dimension_numbers<[2], [2], [1], [1], [0, 0, 0, 1, 1, 1], [0], [0]>} : vector<2x8x8xf32>, vector<2x8x8xf32>, vector<2x8x8xf32> -> vector<2x8x8xf32>
    %cst_21 = arith.constant -1.000000e+09 : f32
    "tpu.trace_stop"() : () -> ()
    %45 = vector.shape_cast %40 : vector<2x1x8xi1> to vector<2x1x8xi1>
    %46 = vector.broadcast %45 : vector<2x1x8xi1> to vector<2x8x8xi1>
    %47 = vector.broadcast %cst_21 : f32 to vector<2x8x8xf32>
    %48 = arith.select %46, %47, %44 : vector<2x8x8xi1>, vector<2x8x8xf32>
    %cst_22 = arith.constant dense<0xFF800000> : vector<2x8xf32>
    %49 = vector.multi_reduction <maximumf>, %48, %cst_22 [2] : vector<2x8x8xf32> to vector<2x8xf32>
    %50 = vector.shape_cast %49 : vector<2x8xf32> to vector<2x8x1xf32>
    %51 = vector.broadcast %50 : vector<2x8x1xf32> to vector<2x8x8xf32>
    %52 = arith.subf %48, %51 : vector<2x8x8xf32>
    %53 = math.exp %52 : vector<2x8x8xf32>
    %cst_23 = arith.constant dense<0.000000e+00> : vector<2x8xf32>
    %54 = vector.multi_reduction <add>, %53, %cst_23 [2] : vector<2x8x8xf32> to vector<2x8xf32>
    %55 = vector.shape_cast %54 : vector<2x8xf32> to vector<2x8x1xf32>
    %56 = tpu.reciprocal %55 : vector<2x8x1xf32> -> vector<2x8x1xf32>
    %57 = vector.broadcast %56 : vector<2x8x1xf32> to vector<2x8x8xf32>
    %58 = arith.mulf %53, %57 : vector<2x8x8xf32>
    "tpu.trace_start"() <{level = 10 : i32, message = "bqk,bkd->bqd"}> : () -> ()
    %cst_24 = arith.constant dense<0.000000e+00> : vector<2x8x8xf32>
    %59 = tpu.matmul %58, %43, %cst_24 {dimension_numbers = #tpu.dot_dimension_numbers<[2], [1], [1], [2], [0, 0, 0, 1, 1, 2], [0], [0]>} : vector<2x8x8xf32>, vector<2x8x8xf32>, vector<2x8x8xf32> -> vector<2x8x8xf32>
    "tpu.trace_stop"() : () -> ()
    %60 = vector.extract_strided_slice %35 {offsets = [0, 0, 8], sizes = [2, 8, 8], strides = [1, 1, 1]} : vector<2x8x32xf32> to vector<2x8x8xf32>
    %61 = vector.extract_strided_slice %36 {offsets = [0, 0, 8], sizes = [2, 8, 8], strides = [1, 1, 1]} : vector<2x8x32xf32> to vector<2x8x8xf32>
    %62 = vector.extract_strided_slice %37 {offsets = [0, 0, 8], sizes = [2, 8, 8], strides = [1, 1, 1]} : vector<2x8x32xf32> to vector<2x8x8xf32>
    "tpu.trace_start"() <{level = 10 : i32, message = "bqd,bkd->bqk"}> : () -> ()
    %cst_25 = arith.constant dense<0.000000e+00> : vector<2x8x8xf32>
    %63 = tpu.matmul %60, %61, %cst_25 {dimension_numbers = #tpu.dot_dimension_numbers<[2], [2], [1], [1], [0, 0, 0, 1, 1, 1], [0], [0]>} : vector<2x8x8xf32>, vector<2x8x8xf32>, vector<2x8x8xf32> -> vector<2x8x8xf32>
    %cst_26 = arith.constant -1.000000e+09 : f32
    "tpu.trace_stop"() : () -> ()
    %64 = vector.shape_cast %40 : vector<2x1x8xi1> to vector<2x1x8xi1>
    %65 = vector.broadcast %64 : vector<2x1x8xi1> to vector<2x8x8xi1>
    %66 = vector.broadcast %cst_26 : f32 to vector<2x8x8xf32>
    %67 = arith.select %65, %66, %63 : vector<2x8x8xi1>, vector<2x8x8xf32>
    %cst_27 = arith.constant dense<0xFF800000> : vector<2x8xf32>
    %68 = vector.multi_reduction <maximumf>, %67, %cst_27 [2] : vector<2x8x8xf32> to vector<2x8xf32>
    %69 = vector.shape_cast %68 : vector<2x8xf32> to vector<2x8x1xf32>
    %70 = vector.broadcast %69 : vector<2x8x1xf32> to vector<2x8x8xf32>
    %71 = arith.subf %67, %70 : vector<2x8x8xf32>
    %72 = math.exp %71 : vector<2x8x8xf32>
    %cst_28 = arith.constant dense<0.000000e+00> : vector<2x8xf32>
    %73 = vector.multi_reduction <add>, %72, %cst_28 [2] : vector<2x8x8xf32> to vector<2x8xf32>
    %74 = vector.shape_cast %73 : vector<2x8xf32> to vector<2x8x1xf32>
    %75 = tpu.reciprocal %74 : vector<2x8x1xf32> -> vector<2x8x1xf32>
    %76 = vector.broadcast %75 : vector<2x8x1xf32> to vector<2x8x8xf32>
    %77 = arith.mulf %72, %76 : vector<2x8x8xf32>
    "tpu.trace_start"() <{level = 10 : i32, message = "bqk,bkd->bqd"}> : () -> ()
    %cst_29 = arith.constant dense<0.000000e+00> : vector<2x8x8xf32>
    %78 = tpu.matmul %77, %62, %cst_29 {dimension_numbers = #tpu.dot_dimension_numbers<[2], [1], [1], [2], [0, 0, 0, 1, 1, 2], [0], [0]>} : vector<2x8x8xf32>, vector<2x8x8xf32>, vector<2x8x8xf32> -> vector<2x8x8xf32>
    "tpu.trace_stop"() : () -> ()
    %79 = vector.extract_strided_slice %35 {offsets = [0, 0, 16], sizes = [2, 8, 8], strides = [1, 1, 1]} : vector<2x8x32xf32> to vector<2x8x8xf32>
    %80 = vector.extract_strided_slice %36 {offsets = [0, 0, 16], sizes = [2, 8, 8], strides = [1, 1, 1]} : vector<2x8x32xf32> to vector<2x8x8xf32>
    %81 = vector.extract_strided_slice %37 {offsets = [0, 0, 16], sizes = [2, 8, 8], strides = [1, 1, 1]} : vector<2x8x32xf32> to vector<2x8x8xf32>
    "tpu.trace_start"() <{level = 10 : i32, message = "bqd,bkd->bqk"}> : () -> ()
    %cst_30 = arith.constant dense<0.000000e+00> : vector<2x8x8xf32>
    %82 = tpu.matmul %79, %80, %cst_30 {dimension_numbers = #tpu.dot_dimension_numbers<[2], [2], [1], [1], [0, 0, 0, 1, 1, 1], [0], [0]>} : vector<2x8x8xf32>, vector<2x8x8xf32>, vector<2x8x8xf32> -> vector<2x8x8xf32>
    %cst_31 = arith.constant -1.000000e+09 : f32
    "tpu.trace_stop"() : () -> ()
    %83 = vector.shape_cast %40 : vector<2x1x8xi1> to vector<2x1x8xi1>
    %84 = vector.broadcast %83 : vector<2x1x8xi1> to vector<2x8x8xi1>
    %85 = vector.broadcast %cst_31 : f32 to vector<2x8x8xf32>
    %86 = arith.select %84, %85, %82 : vector<2x8x8xi1>, vector<2x8x8xf32>
    %cst_32 = arith.constant dense<0xFF800000> : vector<2x8xf32>
    %87 = vector.multi_reduction <maximumf>, %86, %cst_32 [2] : vector<2x8x8xf32> to vector<2x8xf32>
    %88 = vector.shape_cast %87 : vector<2x8xf32> to vector<2x8x1xf32>
    %89 = vector.broadcast %88 : vector<2x8x1xf32> to vector<2x8x8xf32>
    %90 = arith.subf %86, %89 : vector<2x8x8xf32>
    %91 = math.exp %90 : vector<2x8x8xf32>
    %cst_33 = arith.constant dense<0.000000e+00> : vector<2x8xf32>
    %92 = vector.multi_reduction <add>, %91, %cst_33 [2] : vector<2x8x8xf32> to vector<2x8xf32>
    %93 = vector.shape_cast %92 : vector<2x8xf32> to vector<2x8x1xf32>
    %94 = tpu.reciprocal %93 : vector<2x8x1xf32> -> vector<2x8x1xf32>
    %95 = vector.broadcast %94 : vector<2x8x1xf32> to vector<2x8x8xf32>
    %96 = arith.mulf %91, %95 : vector<2x8x8xf32>
    "tpu.trace_start"() <{level = 10 : i32, message = "bqk,bkd->bqd"}> : () -> ()
    %cst_34 = arith.constant dense<0.000000e+00> : vector<2x8x8xf32>
    %97 = tpu.matmul %96, %81, %cst_34 {dimension_numbers = #tpu.dot_dimension_numbers<[2], [1], [1], [2], [0, 0, 0, 1, 1, 2], [0], [0]>} : vector<2x8x8xf32>, vector<2x8x8xf32>, vector<2x8x8xf32> -> vector<2x8x8xf32>
    "tpu.trace_stop"() : () -> ()
    %98 = vector.extract_strided_slice %35 {offsets = [0, 0, 24], sizes = [2, 8, 8], strides = [1, 1, 1]} : vector<2x8x32xf32> to vector<2x8x8xf32>
    %99 = vector.extract_strided_slice %36 {offsets = [0, 0, 24], sizes = [2, 8, 8], strides = [1, 1, 1]} : vector<2x8x32xf32> to vector<2x8x8xf32>
    %100 = vector.extract_strided_slice %37 {offsets = [0, 0, 24], sizes = [2, 8, 8], strides = [1, 1, 1]} : vector<2x8x32xf32> to vector<2x8x8xf32>
    "tpu.trace_start"() <{level = 10 : i32, message = "bqd,bkd->bqk"}> : () -> ()
    %cst_35 = arith.constant dense<0.000000e+00> : vector<2x8x8xf32>
    %101 = tpu.matmul %98, %99, %cst_35 {dimension_numbers = #tpu.dot_dimension_numbers<[2], [2], [1], [1], [0, 0, 0, 1, 1, 1], [0], [0]>} : vector<2x8x8xf32>, vector<2x8x8xf32>, vector<2x8x8xf32> -> vector<2x8x8xf32>
    %cst_36 = arith.constant -1.000000e+09 : f32
    "tpu.trace_stop"() : () -> ()
    %102 = vector.shape_cast %40 : vector<2x1x8xi1> to vector<2x1x8xi1>
    %103 = vector.broadcast %102 : vector<2x1x8xi1> to vector<2x8x8xi1>
    %104 = vector.broadcast %cst_36 : f32 to vector<2x8x8xf32>
    %105 = arith.select %103, %104, %101 : vector<2x8x8xi1>, vector<2x8x8xf32>
    %cst_37 = arith.constant dense<0xFF800000> : vector<2x8xf32>
    %106 = vector.multi_reduction <maximumf>, %105, %cst_37 [2] : vector<2x8x8xf32> to vector<2x8xf32>
    %107 = vector.shape_cast %106 : vector<2x8xf32> to vector<2x8x1xf32>
    %108 = vector.broadcast %107 : vector<2x8x1xf32> to vector<2x8x8xf32>
    %109 = arith.subf %105, %108 : vector<2x8x8xf32>
    %110 = math.exp %109 : vector<2x8x8xf32>
    %cst_38 = arith.constant dense<0.000000e+00> : vector<2x8xf32>
    %111 = vector.multi_reduction <add>, %110, %cst_38 [2] : vector<2x8x8xf32> to vector<2x8xf32>
    %112 = vector.shape_cast %111 : vector<2x8xf32> to vector<2x8x1xf32>
    %113 = tpu.reciprocal %112 : vector<2x8x1xf32> -> vector<2x8x1xf32>
    %114 = vector.broadcast %113 : vector<2x8x1xf32> to vector<2x8x8xf32>
    %115 = arith.mulf %110, %114 : vector<2x8x8xf32>
    "tpu.trace_start"() <{level = 10 : i32, message = "bqk,bkd->bqd"}> : () -> ()
    %cst_39 = arith.constant dense<0.000000e+00> : vector<2x8x8xf32>
    %116 = tpu.matmul %115, %100, %cst_39 {dimension_numbers = #tpu.dot_dimension_numbers<[2], [1], [1], [2], [0, 0, 0, 1, 1, 2], [0], [0]>} : vector<2x8x8xf32>, vector<2x8x8xf32>, vector<2x8x8xf32> -> vector<2x8x8xf32>
    "tpu.trace_stop"() : () -> ()
    %117 = tpu.concatenate %59, %78, %97, %116 in 2 : vector<2x8x8xf32>, vector<2x8x8xf32>, vector<2x8x8xf32>, vector<2x8x8xf32> -> vector<2x8x32xf32>
    %118 = arith.addf %0, %117 : vector<2x8x32xf32>
    %c0_40 = arith.constant 0 : index
    %c0_41 = arith.constant 0 : index
    %119 = vector.load %arg7[%c0_40, %c0_41] : memref<1x32xf32, #tpu.memory_space<vmem>>, vector<1x32xf32>
    %c0_42 = arith.constant 0 : index
    %c0_43 = arith.constant 0 : index
    %120 = vector.load %arg8[%c0_42, %c0_43] : memref<1x32xf32, #tpu.memory_space<vmem>>, vector<1x32xf32>
    %cst_44 = arith.constant dense<0.000000e+00> : vector<2x8xf32>
    %121 = vector.multi_reduction <add>, %118, %cst_44 [2] : vector<2x8x32xf32> to vector<2x8xf32>
    %122 = vector.shape_cast %121 : vector<2x8xf32> to vector<2x8x1xf32>
    %cst_45 = arith.constant 3.200000e+01 : f32
    %123 = vector.broadcast %cst_45 : f32 to vector<2x8x1xf32>
    %124 = arith.divf %122, %123 : vector<2x8x1xf32>
    %125 = vector.broadcast %124 : vector<2x8x1xf32> to vector<2x8x32xf32>
    %126 = arith.subf %118, %125 : vector<2x8x32xf32>
    %127 = arith.mulf %126, %126 : vector<2x8x32xf32>
    %cst_46 = arith.constant dense<0.000000e+00> : vector<2x8xf32>
    %128 = vector.multi_reduction <add>, %127, %cst_46 [2] : vector<2x8x32xf32> to vector<2x8xf32>
    %129 = vector.shape_cast %128 : vector<2x8xf32> to vector<2x8x1xf32>
    %cst_47 = arith.constant 0.0322580636 : f32
    %130 = vector.broadcast %cst_47 : f32 to vector<2x8x1xf32>
    %131 = arith.mulf %129, %130 : vector<2x8x1xf32>
    %132 = math.sqrt %131 : vector<2x8x1xf32>
    %cst_48 = arith.constant 9.99999997E-7 : f32
    %133 = vector.broadcast %cst_48 : f32 to vector<2x8x1xf32>
    %134 = arith.addf %132, %133 : vector<2x8x1xf32>
    %135 = tpu.reciprocal %134 : vector<2x8x1xf32> -> vector<2x8x1xf32>
    %136 = vector.broadcast %135 : vector<2x8x1xf32> to vector<2x8x32xf32>
    %137 = arith.mulf %126, %136 : vector<2x8x32xf32>
    %138 = vector.shape_cast %119 : vector<1x32xf32> to vector<1x1x32xf32>
    %139 = vector.broadcast %138 : vector<1x1x32xf32> to vector<2x8x32xf32>
    %140 = arith.mulf %139, %137 : vector<2x8x32xf32>
    %141 = vector.shape_cast %120 : vector<1x32xf32> to vector<1x1x32xf32>
    %142 = vector.broadcast %141 : vector<1x1x32xf32> to vector<2x8x32xf32>
    %143 = arith.addf %140, %142 : vector<2x8x32xf32>
    %c0_49 = arith.constant 0 : index
    %c0_50 = arith.constant 0 : index
    %c0_51 = arith.constant 0 : index
    %144 = vector.load %arg9[%c0_49, %c0_50, %c0_51] : memref<2x8x32xf32, #tpu.memory_space<vmem>>, vector<2x8x32xf32>
    tpu.vector_store %arg9[%c0_49, %c0_50, %c0_51], %143 {strides = array<i32>} : memref<2x8x32xf32, #tpu.memory_space<vmem>>, vector<2x8x32xf32>,
    return
  }
  func.func @transform_0(%arg0: i32) -> (i32, i32, i32) {
    %c0_i32 = arith.constant 0 : i32
    %c0_i32_0 = arith.constant 0 : i32
    %c0_i32_1 = arith.constant 0 : i32
    return %arg0, %c0_i32, %c0_i32_0 : i32, i32, i32
  }
  func.func @transform_1(%arg0: i32) -> (i32, i32, i32) {
    %c0_i32 = arith.constant 0 : i32
    %c0_i32_0 = arith.constant 0 : i32
    %c0_i32_1 = arith.constant 0 : i32
    return %arg0, %c0_i32, %c0_i32_0 : i32, i32, i32
  }
  func.func @transform_2(%arg0: i32) -> (i32, i32) {
    %c0_i32 = arith.constant 0 : i32
    %c0_i32_0 = arith.constant 0 : i32
    %c0_i32_1 = arith.constant 0 : i32
    return %c0_i32, %c0_i32_0 : i32, i32
  }
  func.func @transform_3(%arg0: i32) -> (i32, i32) {
    %c0_i32 = arith.constant 0 : i32
    %c0_i32_0 = arith.constant 0 : i32
    %c0_i32_1 = arith.constant 0 : i32
    return %c0_i32, %c0_i32_0 : i32, i32
  }
  func.func @transform_4(%arg0: i32) -> (i32, i32) {
    %c0_i32 = arith.constant 0 : i32
    %c0_i32_0 = arith.constant 0 : i32
    %c0_i32_1 = arith.constant 0 : i32
    return %c0_i32, %c0_i32_0 : i32, i32
  }
  func.func @transform_5(%arg0: i32) -> (i32, i32) {
    %c0_i32 = arith.constant 0 : i32
    %c0_i32_0 = arith.constant 0 : i32
    %c0_i32_1 = arith.constant 0 : i32
    return %c0_i32, %c0_i32_0 : i32, i32
  }
  func.func @transform_6(%arg0: i32) -> (i32, i32) {
    %c0_i32 = arith.constant 0 : i32
    %c0_i32_0 = arith.constant 0 : i32
    %c0_i32_1 = arith.constant 0 : i32
    return %c0_i32, %c0_i32_0 : i32, i32
  }
  func.func @transform_7(%arg0: i32) -> (i32, i32) {
    %c0_i32 = arith.constant 0 : i32
    %c0_i32_0 = arith.constant 0 : i32
    %c0_i32_1 = arith.constant 0 : i32
    return %c0_i32, %c0_i32_0 : i32, i32
  }
  func.func @transform_8(%arg0: i32) -> (i32, i32, i32) {
    %c0_i32 = arith.constant 0 : i32
    %c0_i32_0 = arith.constant 0 : i32
    %c0_i32_1 = arith.constant 0 : i32
    return %arg0, %c0_i32, %c0_i32_0 : i32, i32, i32
  }
}

</mosaic_0001>

<bundles_post_ra>
// kernel: tpu_custom_call.1
= control target key start
LH: loop header
LB: loop body
LE: loop exit
PB: predicated region body
PF: predicated region fallthrough
CT: control target
= control target key end

     0   :  { %13 = vsyncpa [#allocation3], 0  ;;  %s2294_s0 = inlined_call_operand.hbm [shape: f32[2,8,32], index: 0, kind: input, shape index: {}]   ;;  %s2295_s1 = inlined_call_operand.vmem [shape: f32[2,1,8], index: 1, kind: input, shape index: {}]   ;;  %s2296_s2 = inlined_call_operand.hbm [shape: f32[32,96], index: 2, kind: input, shape index: {}]   ;;  %s2297_s3 = inlined_call_operand.vmem [shape: f32[1,96], index: 3, kind: input, shape index: {}]   ;;  %s2298_s4 = inlined_call_operand.vmem [shape: f32[1,32], index: 4, kind: input, shape index: {}]   ;;  %s2299_s5 = inlined_call_operand.vmem [shape: f32[1,32], index: 5, kind: input, shape index: {}]   ;;  %s2300_s6 = inlined_call_operand.vmem [shape: f32[1,32], index: 6, kind: input, shape index: {}]   ;;  %s2301_s7 = inlined_call_operand.vmem [shape: f32[1,32], index: 7, kind: input, shape index: {}]   ;;  %s2302_s8 = inlined_call_operand.hbm [shape: f32[2,8,32], index: 8, kind: output, shape index: {}]  }
   0x1   :  { %14 = vsyncpa [#allocation6], 0 }
   0x2   :  { %15 = vsyncpa [#allocation4], 0  ;;  %s1980_s27 = smov [#allocation2]   ;;  %s1908_s9 = scalar_lea.hbm %s2294_s0, 256 }
   0x3   :  { %s21_s28 = sshll.u32 %s1980_s27, 4  ;;  %p1909_p0 = scmp.ne.s32.totalorder %s2294_s0, %s1908_s9  ;;  %s22_s28 = int_to_ptr.vmem [resolvable:$true] %s21_s28 }
   0x4   :  { %p1912_p1 = scmp.lt.u32.totalorder %s1908_s9, %s2294_s0 }
   0x6   :  { %p1914_p2 = pnand %p1912_p1, %p1909_p0 }
   0x8   :  { %1917 = shalt.err (!%p1914_p2)
}
   0x9   :  { %s1918_s14 = scalar_lea.vmem %s22_s28, 256  ;;  %p1923_p4 = scmp.lt.s32.totalorder %s22_s28, %s22_s28 }
   0xa   :  { %p1919_p3 = scmp.ne.s32.totalorder %s22_s28, %s1918_s14  ;;  %p1924_p5 = scmp.lt.s32.totalorder %s1918_s14, %s1918_s14 }
   0xc   :  { %p1925_p6 = por %p1924_p5, %p1923_p4 }
   0xe   :  { %p1926_p7 = pnand %p1925_p6, %p1919_p3 }
  0x10   :  { %1929 = shalt.err (!%p1926_p7)
}
  0x11   :  { %s1981_s15 = smov 128   ;;  %s1982_s16 = smov 8  }
  0x12   :  { %27 = dma.hbm_to_vmem [thread:$0]  %s2294_s0, 256, %s22_s28, [#allocation3], %s1981_s15, %s1981_s15, %s1982_s16  }
  0x13   :  { %s1983_s19 = smov [#allocation5]   ;;  %s1930_s23 = scalar_lea.hbm %s2296_s2, 512 }
  0x14   :  { %s35_s20 = sshll.u32 %s1983_s19, 4  ;;  %p1931_p8 = scmp.ne.s32.totalorder %s2296_s2, %s1930_s23  ;;  %s36_s20 = int_to_ptr.vmem [resolvable:$true] %s35_s20 }
  0x15   :  { %p1934_p9 = scmp.lt.u32.totalorder %s1930_s23, %s2296_s2 }
  0x17   :  { %p1936_p10 = pnand %p1934_p9, %p1931_p8 }
  0x19   :  { %1939 = shalt.err (!%p1936_p10)
}
  0x1a   :  { %s1940_s29 = scalar_lea.vmem %s36_s20, 512  ;;  %p1945_p12 = scmp.lt.s32.totalorder %s36_s20, %s36_s20 }
  0x1b   :  { %p1941_p11 = scmp.ne.s32.totalorder %s36_s20, %s1940_s29  ;;  %p1946_p13 = scmp.lt.s32.totalorder %s1940_s29, %s1940_s29 }
  0x1d   :  { %p1947_p0 = por %p1946_p13, %p1945_p12 }
  0x1f   :  { %p1948_p1 = pnand %p1947_p0, %p1941_p11 }
  0x21   :  { %1951 = shalt.err (!%p1948_p1)
}
  0x22   :  { %41 = dma.hbm_to_vmem [thread:$0]  %s2296_s2, 512, %s36_s20, [#allocation6], %s1981_s15, %s1981_s15, %s1982_s16  }
  0x23   :  { %1974 = dma.done.wait [#allocation3], 256  }
  0x24   :  { %1975 = vsyncadd [#allocation3], 4294967040 }
  0x25   :  { %1976 = dma.done.wait [#allocation6], 512  }
  0x26   :  { %1977 = vsyncadd [#allocation6], 4294966784  ;;  %vm62_vm0 = vcmask 261120   ;;  %v2076_v0 = vld [vmem:[#allocation2] sm:$0xff]  ;;  %v2078_v1 = vld [vmem:[#allocation2 + $0x8] sm:$0xff]  ;;  %v1984_v46 = vmov 0.0   ;;  %v377_v56 = vlaneseq }
  0x27   :  { %v63_v2 = vsel %vm62_vm0, %v2076_v0, 0.0  ;;  %v66_v3 = vsel %vm62_vm0, %v2078_v1, 0.0  ;;  %v120_v14 = vld [vmem:[#allocation5] sm:$0xff]  ;;  %v121_v15 = vld [vmem:[#allocation5 + $0x8] sm:$0xff]  ;;  %v122_v16 = vld [vmem:[#allocation5 + $0x10] sm:$0xff]  ;;  %1751 = vmatprep.subr.mxu1 %v1984_v46  ;;  %vm1985_vm5 = vmmov 0  }
  0x28   :  { %64 = vadd.xlane.f32.xlu0 %v63_v2  ;;  %v1831_v17 = vpack.c.bf16 %v121_v15, %v120_v14  ;;  %v123_v18 = vld [vmem:[#allocation5 + $0x18] sm:$0xff]  ;;  %v1671_v37 = vld [vmem:[%s2298_s4] ss:$0 sm:$0xff]  ;;  %1753 = vmatprep.mubr.msk.f32.mxu1 %vm1985_vm5, %v1984_v46  ;;  %s1986_s11 = smov 96   ;;  %vm221_vm6 = vcmask 64512   ;;  %v378_v58 = vshrl.u32 %v377_v56, 7 }
  0x29   :  { %v1835_v19 = vpack.c.bf16 %v123_v18, %v122_v16  ;;  %v1672_v39 = vld [vmem:[%s2299_s5] ss:$0 sm:$0xff]  ;;  %v215_v59 = vld [vmem:[%s2295_s1 + $0x1] sm:$0x1]  ;;  %v1987_v61 = vmov 0   ;;  %s1989_s17 = smov 88  }
  0x2a   :  { %1832 = vmatprep.subr.bf16.mxu0 %v1831_v17  ;;  %v1673_v47 = vld [vmem:[%s2297_s3] ss:$0 sm:$0xff]  ;;  %v379_v60 = vsub.s32 0, %v378_v58  ;;  %vm217_vm8 = vcmp.eq.f32.partialorder %v215_v59, 0.0  ;;  %s1990_s18 = smov 120   ;;  %s1991_s19 = smov 56  }
  0x2b   :  { %1834 = vmatpush3.bf16.msra.mxu0 %v1831_v17  ;;  %v214_v57 = vld [vmem:[%s2295_s1] sm:$0x1]  ;;  %v376_v2 = vsel %vm217_vm8, 1, %v1987_v61  ;;  %s1988_s1 = smov 64   ;;  %s1992_s20 = smov 80   ;;  %vm1588_vm11 = vcmask 195584  }
  0x2c   :  { %67 = vadd.xlane.f32.xlu0 %v66_v3  ;;  %1836 = vmatprep.subr.bf16.mxu0 %v1835_v19  ;;  %vm216_vm7 = vcmp.eq.f32.partialorder %v214_v57, 0.0  ;;  %v2138_v3 = vrot.slane %v376_v2, %v379_v60  ;;  %s1993_s21 = smov 112   ;;  %s1994_s22 = smov 48   ;;  %vm1585_vm12 = vcmask 130048  }
  0x2d   :  { %v375_v62 = vsel %vm216_vm7, 1, %v1987_v61  ;;  %s1995_s23 = smov 72   ;;  %s1996_s24 = smov 104  }
  0x2e   :  { %v2135_v63 = vrot.slane %v375_v62, %v379_v60  ;;  %vm386_vm10 = vcmp.eq.s32.totalorder %v2138_v3, 1  ;;  %s1997_s25 = smov 40   ;;  %s1998_s26 = smov 16  }
  0x2f   :  { %1838 = vmatpush3.bf16.msra.mxu0 %v1835_v19  ;;  %s1999_s27 = smov 24   ;;  %s2000_s30 = smov [#allocation7]  }
  0x30   :  { %1761 = vmatprep.subr.mxu0 %v1984_v46  ;;  %vm385_vm9 = vcmp.eq.s32.totalorder %v2135_v63, 1  ;;  %s1658_s9 = sshll.u32 %s2000_s30, 4  ;;  %s1659_s9 = int_to_ptr.vmem [resolvable:$true] %s1658_s9 }
  0x31   :  { %s1952_s10 = scalar_lea.vmem %s1659_s9, 256  ;;  %p1957_p3 = scmp.lt.s32.totalorder %s1659_s9, %s1659_s9 }
  0x32   :  { %p1953_p2 = scmp.ne.s32.totalorder %s1659_s9, %s1952_s10  ;;  %p1958_p4 = scmp.lt.s32.totalorder %s1952_s10, %s1952_s10 }
  0x34   :  { %p1959_p5 = por %p1958_p4, %p1957_p3 }
  0x36   :  { %p1960_p6 = pnand %p1959_p5, %p1953_p2 }
  0xb5   :  { %v65_v4 = vpop.xlane.xlu0 %64 }
  0xb6   :  { %v70_v5 = vmul.f32 0.03125, %v65_v4 }
  0xb8   :  { %v72_v6 = vsub.f32 %v2076_v0, %v70_v5 }
  0xb9   :  { %v68_v7 = vpop.xlane.xlu0 %67 }
  0xba   :  { %v71_v8 = vmul.f32 0.03125, %v68_v7  ;;  %v74_v9 = vmul.f32 %v72_v6, %v72_v6 }
  0xbc   :  { %v73_v10 = vsub.f32 %v2078_v1, %v71_v8  ;;  %v76_v11 = vsel %vm62_vm0, %v74_v9, 0.0 }
  0xbd   :  { %77 = vadd.xlane.f32.xlu1 %v76_v11 }
  0xbe   :  { %v75_v12 = vmul.f32 %v73_v10, %v73_v10 }
  0xc0   :  { %v79_v13 = vsel %vm62_vm0, %v75_v12, 0.0 }
  0xc1   :  { %80 = vadd.xlane.f32.xlu1 %v79_v13 }
 0x14a   :  { %v78_v20 = vpop.xlane.xlu1 %77 }
 0x14b   :  { %v82_v21 = vmul.f32 0.032258064, %v78_v20 }
 0x14d   :  { %1860 = vrsqrt.f32 %v82_v21  ;;  %vm86_vm1 = vcmp.eq.f32.partialorder %v82_v21, inf  ;;  %v89_v26 = vand.u32 2147483648, %v82_v21  ;;  %vm88_vm2 = vcmp.eq.f32.partialorder %v82_v21, 0.0 }
 0x14e   :  { %v81_v22 = vpop.xlane.xlu1 %80 }
 0x14f   :  { %v83_v23 = vmul.f32 0.032258064, %v81_v22 }
 0x151   :  { %1862 = vrsqrt.f32 %v83_v23  ;;  %vm93_vm3 = vcmp.eq.f32.partialorder %v83_v23, inf  ;;  %v96_v32 = vand.u32 2147483648, %v83_v23  ;;  %vm95_vm4 = vcmp.eq.f32.partialorder %v83_v23, 0.0 }
 0x157   :  { %v1861_v24 = vpop.eup %1860 }
 0x158   :  { %v85_v25 = vmul.f32 %v1861_v24, %v82_v21 }
 0x15a   :  { %v87_v27 = vsel %vm86_vm1, %v82_v21, %v85_v25 }
 0x15b   :  { %v1863_v28 = vpop.eup %1862  ;;  %v90_v29 = vsel %vm88_vm2, %v89_v26, %v87_v27 }
 0x15c   :  { %v92_v30 = vmul.f32 %v1863_v28, %v83_v23  ;;  %v98_v31 = vadd.f32 1e-06, %v90_v29 }
 0x15e   :  { %v94_v33 = vsel %vm93_vm3, %v83_v23, %v92_v30  ;;  %1864 = vrcp.f32 %v98_v31 }
 0x15f   :  { %v97_v34 = vsel %vm95_vm4, %v96_v32, %v94_v33 }
 0x160   :  { %v99_v35 = vadd.f32 1e-06, %v97_v34 }
 0x162   :  { %1866 = vrcp.f32 %v99_v35 }
 0x168   :  { %v1865_v36 = vpop.eup %1864 }
 0x169   :  { %v102_v38 = vmul.f32 %v1865_v36, %v72_v6 }
 0x16b   :  { %v110_v40 = vmul.f32 %v1671_v37, %v102_v38 }
 0x16c   :  { %v1867_v41 = vpop.eup %1866 }
 0x16d   :  { %v103_v42 = vmul.f32 %v1867_v41, %v73_v10  ;;  %v118_v43 = vadd.f32 %v1672_v39, %v110_v40 }
 0x16f   :  { %v111_v44 = vmul.f32 %v1671_v37, %v103_v42  ;;  %1748 = vmatprep.mubr.msk.f32.mxu0 %vm62_vm0, %v118_v43 }
 0x171   :  { %v119_v45 = vadd.f32 %v1672_v39, %v111_v44 }
 0x173   :  { %1749 = vmatmul.mubr.msk.f32.vlgmr.msra.gmra.mrb[0].mxu0 %vm62_vm0, %v119_v45 }
 0x174   :  { %1763 = vmatprep.mubr.msk.f32.mxu0 %vm1985_vm5, %v1984_v46 }
 0x246   :  { %v1750_v48 = vpop.f32.mrb[0].mxu0 }
 0x247   :  { %v2105_v49 = vadd.f32 %v1750_v48, %v1673_v47  ;;  %v203_v50 = vpop.f32.mrb[1].mxu0 }
 0x248   :  { %v2107_v51 = vadd.f32 %v1673_v47, %v203_v50 }
 0x249   :  { %298 = vrot.lane.b32.xlu1 %v2105_v49, %s1986_s11  ;;  %v2122_v55 = vmul.f32 0.35355338, %v2105_v49 }
 0x24a   :  { %219 = vrot.lane.b32.xlu0 %v2107_v51, %s1986_s11  ;;  %v2113_v53 = vmul.f32 0.35355338, %v2107_v51 }
 0x2bb   :  { %v299_v54 = vpop.permute.xlu1 %298 }
 0x2bc   :  { %v220_v52 = vpop.permute.xlu0 %219 }
 0x2bd   :  { %1752 = vmatpush3.xpose.msk.msra.mxu1 %vm221_vm6, %v220_v52 }
 0x2be   :  { %1756 = vmatprep.subr.mxu1 %v1984_v46 }
 0x2c0   :  { %1754 = vmatmul.mubr.msk.f32.vlgmr.msra.gmra.mrb[0].mxu1 %vm221_vm6, %v2113_v53 }
 0x2c1   :  { %1757 = vmatpush3.xpose.msk.msra.mxu1 %vm221_vm6, %v299_v54  ;;  %1758 = vmatprep.mubr.msk.f32.mxu1 %vm1985_vm5, %v1984_v46 }
 0x2c2   :  { %1766 = vmatprep.subr.mxu1 %v1984_v46 }
 0x2c4   :  { %1759 = vmatmul.mubr.msk.f32.vlgmr.msra.gmra.mrb[2].mxu1 %vm221_vm6, %v2122_v55 }
 0x2c5   :  { %1768 = vmatprep.mubr.msk.f32.mxu1 %vm1985_vm5, %v1984_v46 }
 0x393   :  { %v293_v4 = vpop.f32.mrb[0].mxu1 }
 0x394   :  { %v387_v5 = vsel %vm385_vm9, -1e+09, %v293_v4  ;;  %v1755_v6 = vpop.f32.mrb[1].mxu1 }
 0x395   :  { %v389_v7 = vsel %vm221_vm6, %v387_v5, -inf }
 0x396   :  { %390 = vmax.xlane.f32.xlu1 %v389_v7 }
 0x397   :  { %v371_v8 = vpop.f32.mrb[2].mxu1 }
 0x398   :  { %v388_v9 = vsel %vm386_vm10, -1e+09, %v371_v8  ;;  %v1760_v10 = vpop.f32.mrb[3].mxu1 }
 0x399   :  { %v392_v11 = vsel %vm221_vm6, %v388_v9, -inf }
 0x39a   :  { %393 = vmax.xlane.f32.xlu0 %v392_v11 }
 0x3a7   :  { %487 = vrot.lane.b32.xlu1 %v2105_v49, %s1988_s1 }
 0x3ab   :  { %565 = vrot.lane.b32.xlu1 %v2107_v51, %s1989_s17 }
 0x3af   :  { %643 = vrot.lane.b32.xlu1 %v2105_v49, %s1989_s17 }
 0x3b0   :  { %411 = vrot.lane.b32.xlu0 %v2107_v51, %s1988_s1 }
 0x423   :  { %v391_v12 = vpop.xlane.xlu1 %390 }
 0x424   :  { %v395_v13 = vsub.f32 %v387_v5, %v391_v12 }
 0x426   :  { %v397_v14 = vmul.f32 1.442695, %v395_v13 }
 0x427   :  { %v488_v15 = vpop.permute.xlu1 %487  ;;  %v394_v16 = vpop.xlane.xlu0 %393 }
 0x428   :  { %1868 = vpow2.f32 %v397_v14  ;;  %v396_v17 = vsub.f32 %v388_v9, %v394_v16  ;;  %1767 = vmatpush3.msra.mxu1 %v488_v15 }
 0x429   :  { %1776 = vmatprep.subr.mxu1 %v1984_v46 }
 0x42a   :  { %v399_v18 = vmul.f32 1.442695, %v396_v17 }
 0x42b   :  { %v412_v19 = vpop.permute.xlu0 %411  ;;  %v566_v24 = vpop.permute.xlu1 %565 }
 0x42c   :  { %1870 = vpow2.f32 %v399_v18  ;;  %1762 = vmatpush3.msra.mxu0 %v412_v19 }
 0x42d   :  { %1771 = vmatprep.subr.mxu0 %v1984_v46 }
 0x42f   :  { %v644_v25 = vpop.permute.xlu1 %643 }
 0x432   :  { %v1869_v20 = vpop.eup %1868 }
 0x433   :  { %v401_v21 = vsel %vm221_vm6, %v1869_v20, 0.0 }
 0x434   :  { %402 = vadd.xlane.f32.xlu0 %v401_v21 }
 0x436   :  { %v1871_v22 = vpop.eup %1870 }
 0x437   :  { %v404_v23 = vsel %vm221_vm6, %v1871_v22, 0.0 }
 0x438   :  { %405 = vadd.xlane.f32.xlu1 %v404_v23 }
 0x449   :  { %641 = vrot.lane.b32.xlu1 %v2122_v55, %s1990_s18 }
 0x44a   :  { %563 = vrot.lane.b32.xlu0 %v2113_v53, %s1990_s18 }
 0x4c1   :  { %v403_v26 = vpop.xlane.xlu0 %402 }
 0x4c2   :  { %1872 = vrcp.f32 %v403_v26 }
 0x4c5   :  { %v406_v27 = vpop.xlane.xlu1 %405  ;;  %v564_v32 = vpop.permute.xlu0 %563 }
 0x4c6   :  { %1874 = vrcp.f32 %v406_v27 }
 0x4c9   :  { %v642_v33 = vpop.permute.xlu1 %641 }
 0x4cc   :  { %v1873_v28 = vpop.eup %1872 }
 0x4cd   :  { %v409_v29 = vmul.f32 %v1873_v28, %v1869_v20 }
 0x4cf   :  { %1764 = vmatmul.mubr.msk.f32.vlgmr.msra.gmra.mrb[2].mxu0 %vm221_vm6, %v409_v29 }
 0x4d0   :  { %v1875_v30 = vpop.eup %1874  ;;  %1772 = vmatpush3.xpose.msk.msra.mxu0 %vm221_vm6, %v566_v24  ;;  %1773 = vmatprep.mubr.msk.f32.mxu0 %vm1985_vm5, %v1984_v46 }
 0x4d1   :  { %v410_v31 = vmul.f32 %v1875_v30, %v1871_v22  ;;  %1781 = vmatprep.subr.mxu0 %v1984_v46 }
 0x4d3   :  { %1769 = vmatmul.mubr.msk.f32.vlgmr.msra.gmra.mrb[4].mxu1 %vm221_vm6, %v410_v31  ;;  %1774 = vmatmul.mubr.msk.f32.vlgmr.msra.gmra.mrb[4].mxu0 %vm221_vm6, %v564_v32 }
 0x4d4   :  { %1777 = vmatpush3.xpose.msk.msra.mxu1 %vm221_vm6, %v644_v25  ;;  %1778 = vmatprep.mubr.msk.f32.mxu1 %vm1985_vm5, %v1984_v46 }
 0x4d5   :  { %1786 = vmatprep.subr.mxu1 %v1984_v46  ;;  %1783 = vmatprep.mubr.msk.f32.mxu0 %vm1985_vm5, %v1984_v46 }
 0x4d7   :  { %1779 = vmatmul.mubr.msk.f32.vlgmr.msra.gmra.mrb[6].mxu1 %vm221_vm6, %v642_v33 }
 0x4d8   :  { %1788 = vmatprep.mubr.msk.f32.mxu1 %vm1985_vm5, %v1984_v46 }
 0x5a2   :  { %v2173_v34 = vpop.f32.mrb[2].mxu0 }
 0x5a3   :  { %v1765_v35 = vpop.f32.mrb[3].mxu0 }
 0x5a6   :  { %v2175_v36 = vpop.f32.mrb[4].mxu1  ;;  %v637_v37 = vpop.f32.mrb[4].mxu0 }
 0x5a7   :  { %v719_v38 = vsel %vm385_vm9, -1e+09, %v637_v37  ;;  %v1770_v39 = vpop.f32.mrb[5].mxu1  ;;  %v1775_v40 = vpop.f32.mrb[5].mxu0 }
 0x5a8   :  { %v721_v41 = vsel %vm221_vm6, %v719_v38, -inf }
 0x5a9   :  { %722 = vmax.xlane.f32.xlu0 %v721_v41 }
 0x5aa   :  { %v715_v42 = vpop.f32.mrb[6].mxu1 }
 0x5ab   :  { %v720_v43 = vsel %vm386_vm10, -1e+09, %v715_v42  ;;  %v1780_v44 = vpop.f32.mrb[7].mxu1 }
 0x5ac   :  { %v724_v45 = vsel %vm221_vm6, %v720_v43, -inf }
 0x5ad   :  { %725 = vmax.xlane.f32.xlu1 %v724_v45 }
 0x5be   :  { %819 = vrot.lane.b32.xlu1 %v2105_v49, %s1991_s19 }
 0x5bf   :  { %743 = vrot.lane.b32.xlu0 %v2107_v51, %s1991_s19 }
 0x5c2   :  { %897 = vrot.lane.b32.xlu1 %v2107_v51, %s1992_s20 }
 0x5c6   :  { %975 = vrot.lane.b32.xlu1 %v2105_v49, %s1992_s20 }
 0x5ca   :  { %973 = vrot.lane.b32.xlu1 %v2122_v55, %s1993_s21 }
 0x636   :  { %v723_v47 = vpop.xlane.xlu0 %722 }
 0x637   :  { %v727_v48 = vsub.f32 %v719_v38, %v723_v47 }
 0x639   :  { %v729_v50 = vmul.f32 1.442695, %v727_v48 }
 0x63a   :  { %v744_v52 = vpop.permute.xlu0 %743  ;;  %v726_v54 = vpop.xlane.xlu1 %725 }
 0x63b   :  { %1876 = vpow2.f32 %v729_v50  ;;  %v728_v56 = vsub.f32 %v720_v43, %v726_v54  ;;  %1782 = vmatpush3.msra.mxu0 %v744_v52 }
 0x63c   :  { %1791 = vmatprep.subr.mxu0 %v1984_v46 }
 0x63d   :  { %v731_v57 = vmul.f32 1.442695, %v728_v56 }
 0x63e   :  { %v820_v58 = vpop.permute.xlu1 %819 }
 0x63f   :  { %1878 = vpow2.f32 %v731_v57  ;;  %1787 = vmatpush3.msra.mxu1 %v820_v58 }
 0x640   :  { %1796 = vmatprep.subr.mxu1 %v1984_v46 }
 0x642   :  { %v898_v5 = vpop.permute.xlu1 %897 }
 0x645   :  { %v1877_v59 = vpop.eup %1876 }
 0x646   :  { %v733_v60 = vsel %vm221_vm6, %v1877_v59, 0.0  ;;  %v976_v9 = vpop.permute.xlu1 %975 }
 0x647   :  { %734 = vadd.xlane.f32.xlu0 %v733_v60 }
 0x649   :  { %v1879_v61 = vpop.eup %1878 }
 0x64a   :  { %v736_v62 = vsel %vm221_vm6, %v1879_v61, 0.0  ;;  %v974_v12 = vpop.permute.xlu1 %973 }
 0x64b   :  { %737 = vadd.xlane.f32.xlu0 %v736_v62 }
 0x661   :  { %895 = vrot.lane.b32.xlu0 %v2113_v53, %s1993_s21 }
 0x6d4   :  { %v735_v2 = vpop.xlane.xlu0 %734 }
 0x6d5   :  { %1880 = vrcp.f32 %v735_v2 }
 0x6d8   :  { %v738_v4 = vpop.xlane.xlu0 %737 }
 0x6d9   :  { %1882 = vrcp.f32 %v738_v4 }
 0x6dc   :  { %v896_v11 = vpop.permute.xlu0 %895 }
 0x6df   :  { %v1881_v6 = vpop.eup %1880 }
 0x6e0   :  { %v741_v7 = vmul.f32 %v1881_v6, %v1877_v59 }
 0x6e2   :  { %1784 = vmatmul.mubr.msk.f32.vlgmr.msra.gmra.mrb[6].mxu0 %vm221_vm6, %v741_v7 }
 0x6e3   :  { %v1883_v8 = vpop.eup %1882  ;;  %1792 = vmatpush3.xpose.msk.msra.mxu0 %vm221_vm6, %v898_v5  ;;  %1793 = vmatprep.mubr.msk.f32.mxu0 %vm1985_vm5, %v1984_v46 }
 0x6e4   :  { %v742_v10 = vmul.f32 %v1883_v8, %v1879_v61  ;;  %1801 = vmatprep.subr.mxu0 %v1984_v46 }
 0x6e6   :  { %1789 = vmatmul.mubr.msk.f32.vlgmr.msra.gmra.mrb[8].mxu1 %vm221_vm6, %v742_v10  ;;  %1794 = vmatmul.mubr.msk.f32.vlgmr.msra.gmra.mrb[8].mxu0 %vm221_vm6, %v896_v11 }
 0x6e7   :  { %1797 = vmatpush3.xpose.msk.msra.mxu1 %vm221_vm6, %v976_v9  ;;  %1798 = vmatprep.mubr.msk.f32.mxu1 %vm1985_vm5, %v1984_v46 }
 0x6e8   :  { %1806 = vmatprep.subr.mxu1 %v1984_v46  ;;  %1803 = vmatprep.mubr.msk.f32.mxu0 %vm1985_vm5, %v1984_v46 }
 0x6ea   :  { %1799 = vmatmul.mubr.msk.f32.vlgmr.msra.gmra.mrb[10].mxu1 %vm221_vm6, %v974_v12 }
 0x6eb   :  { %1808 = vmatprep.mubr.msk.f32.mxu1 %vm1985_vm5, %v1984_v46 }
 0x7b5   :  { %v2209_v13 = vpop.f32.mrb[6].mxu0 }
 0x7b6   :  { %v1785_v14 = vpop.f32.mrb[7].mxu0 }
 0x7b9   :  { %v2211_v15 = vpop.f32.mrb[8].mxu1  ;;  %v969_v16 = vpop.f32.mrb[8].mxu0 }
 0x7ba   :  { %v1051_v17 = vsel %vm385_vm9, -1e+09, %v969_v16  ;;  %v1790_v18 = vpop.f32.mrb[9].mxu1  ;;  %v1795_v19 = vpop.f32.mrb[9].mxu0 }
 0x7bb   :  { %v1053_v20 = vsel %vm221_vm6, %v1051_v17, -inf }
 0x7bc   :  { %1054 = vmax.xlane.f32.xlu0 %v1053_v20 }
 0x7bd   :  { %v1047_v21 = vpop.f32.mrb[10].mxu1 }
 0x7be   :  { %v1052_v22 = vsel %vm386_vm10, -1e+09, %v1047_v21  ;;  %v1800_v23 = vpop.f32.mrb[11].mxu1 }
 0x7bf   :  { %v1056_v24 = vsel %vm221_vm6, %v1052_v22, -inf }
 0x7c0   :  { %1057 = vmax.xlane.f32.xlu1 %v1056_v24 }
 0x7d1   :  { %1151 = vrot.lane.b32.xlu1 %v2105_v49, %s1994_s22 }
 0x7d2   :  { %1075 = vrot.lane.b32.xlu0 %v2107_v51, %s1994_s22 }
 0x7d5   :  { %1229 = vrot.lane.b32.xlu1 %v2107_v51, %s1995_s23 }
 0x7d9   :  { %1307 = vrot.lane.b32.xlu1 %v2105_v49, %s1995_s23 }
 0x7dd   :  { %1305 = vrot.lane.b32.xlu1 %v2122_v55, %s1996_s24 }
 0x849   :  { %v1055_v25 = vpop.xlane.xlu0 %1054 }
 0x84a   :  { %v1059_v26 = vsub.f32 %v1051_v17, %v1055_v25 }
 0x84c   :  { %v1061_v27 = vmul.f32 1.442695, %v1059_v26 }
 0x84d   :  { %v1076_v28 = vpop.permute.xlu0 %1075  ;;  %v1058_v29 = vpop.xlane.xlu1 %1057 }
 0x84e   :  { %1884 = vpow2.f32 %v1061_v27  ;;  %v1060_v30 = vsub.f32 %v1052_v22, %v1058_v29  ;;  %1802 = vmatpush3.msra.mxu0 %v1076_v28 }
 0x84f   :  { %1811 = vmatprep.subr.mxu0 %v1984_v46 }
 0x850   :  { %v1063_v31 = vmul.f32 1.442695, %v1060_v30 }
 0x851   :  { %v1152_v32 = vpop.permute.xlu1 %1151 }
 0x852   :  { %1886 = vpow2.f32 %v1063_v31  ;;  %1807 = vmatpush3.msra.mxu1 %v1152_v32 }
 0x853   :  { %1816 = vmatprep.subr.mxu1 %v1984_v46 }
 0x855   :  { %v1230_v40 = vpop.permute.xlu1 %1229 }
 0x858   :  { %v1885_v33 = vpop.eup %1884 }
 0x859   :  { %v1065_v35 = vsel %vm221_vm6, %v1885_v33, 0.0  ;;  %v1308_v44 = vpop.permute.xlu1 %1307 }
 0x85a   :  { %1066 = vadd.xlane.f32.xlu0 %v1065_v35 }
 0x85c   :  { %v1887_v55 = vpop.eup %1886 }
 0x85d   :  { %v1068_v37 = vsel %vm221_vm6, %v1887_v55, 0.0  ;;  %v1306_v47 = vpop.permute.xlu1 %1305 }
 0x85e   :  { %1069 = vadd.xlane.f32.xlu0 %v1068_v37 }
 0x874   :  { %1227 = vrot.lane.b32.xlu0 %v2113_v53, %s1996_s24 }
 0x8e7   :  { %v1067_v38 = vpop.xlane.xlu0 %1066 }
 0x8e8   :  { %1888 = vrcp.f32 %v1067_v38 }
 0x8eb   :  { %v1070_v39 = vpop.xlane.xlu0 %1069 }
 0x8ec   :  { %1890 = vrcp.f32 %v1070_v39 }
 0x8ef   :  { %v1228_v53 = vpop.permute.xlu0 %1227 }
 0x8f2   :  { %v1889_v41 = vpop.eup %1888 }
 0x8f3   :  { %v1073_v42 = vmul.f32 %v1889_v41, %v1885_v33 }
 0x8f5   :  { %1804 = vmatmul.mubr.msk.f32.vlgmr.msra.gmra.mrb[10].mxu0 %vm221_vm6, %v1073_v42 }
 0x8f6   :  { %v1891_v43 = vpop.eup %1890  ;;  %1812 = vmatpush3.xpose.msk.msra.mxu0 %vm221_vm6, %v1230_v40  ;;  %1813 = vmatprep.mubr.msk.f32.mxu0 %vm1985_vm5, %v1984_v46 }
 0x8f7   :  { %v1074_v45 = vmul.f32 %v1891_v43, %v1887_v55  ;;  %1821 = vmatprep.subr.mxu0 %v1984_v46 }
 0x8f9   :  { %1809 = vmatmul.mubr.msk.f32.vlgmr.msra.gmra.mrb[12].mxu1 %vm221_vm6, %v1074_v45  ;;  %1814 = vmatmul.mubr.msk.f32.vlgmr.msra.gmra.mrb[12].mxu0 %vm221_vm6, %v1228_v53 }
 0x8fa   :  { %1817 = vmatpush3.xpose.msk.msra.mxu1 %vm221_vm6, %v1308_v44  ;;  %1818 = vmatprep.mubr.msk.f32.mxu1 %vm1985_vm5, %v1984_v46 }
 0x8fb   :  { %1826 = vmatprep.subr.mxu1 %v1984_v46  ;;  %1823 = vmatprep.mubr.msk.f32.mxu0 %vm1985_vm5, %v1984_v46 }
 0x8fd   :  { %1819 = vmatmul.mubr.msk.f32.vlgmr.msra.gmra.mrb[14].mxu1 %vm221_vm6, %v1306_v47 }
 0x8fe   :  { %1828 = vmatprep.mubr.msk.f32.mxu1 %vm1985_vm5, %v1984_v46 }
 0x9c8   :  { %v1147_v48 = vpop.f32.mrb[10].mxu0 }
 0x9c9   :  { %v1805_v50 = vpop.f32.mrb[11].mxu0 }
 0x9cc   :  { %v1223_v52 = vpop.f32.mrb[12].mxu1  ;;  %v1301_v54 = vpop.f32.mrb[12].mxu0 }
 0x9cd   :  { %v1383_v56 = vsel %vm385_vm9, -1e+09, %v1301_v54  ;;  %v1810_v57 = vpop.f32.mrb[13].mxu1  ;;  %v1815_v58 = vpop.f32.mrb[13].mxu0 }
 0x9ce   :  { %v1385_v59 = vsel %vm221_vm6, %v1383_v56, -inf }
 0x9cf   :  { %1386 = vmax.xlane.f32.xlu0 %v1385_v59 }
 0x9d0   :  { %v1379_v60 = vpop.f32.mrb[14].mxu1 }
 0x9d1   :  { %v1384_v61 = vsel %vm386_vm10, -1e+09, %v1379_v60  ;;  %v1820_v62 = vpop.f32.mrb[15].mxu1 }
 0x9d2   :  { %v1388_v2 = vsel %vm221_vm6, %v1384_v61, -inf }
 0x9d3   :  { %1389 = vmax.xlane.f32.xlu1 %v1388_v2 }
 0x9e4   :  { %1483 = vrot.lane.b32.xlu1 %v2105_v49, %s1997_s25 }
 0x9e8   :  { %1561 = vrot.lane.b32.xlu1 %v2209_v13, %s1982_s16 }
 0x9ec   :  { %1563 = vrot.lane.b32.xlu1 %v2211_v15, %s1982_s16 }
 0x9f0   :  { %1571 = vrot.lane.b32.xlu1 %v1223_v52, %s1998_s26 }
 0xa5c   :  { %v1387_v46 = vpop.xlane.xlu0 %1386 }
 0xa5d   :  { %v1391_v63 = vsub.f32 %v1383_v56, %v1387_v46 }
 0xa5f   :  { %v1393_v4 = vmul.f32 1.442695, %v1391_v63  ;;  %v1700_v63 = vld [vmem:[%s2300_s6] ss:$0 sm:$0xff] }
 0xa60   :  { %v1390_v3 = vpop.xlane.xlu1 %1389 }
 0xa61   :  { %1892 = vpow2.f32 %v1393_v4  ;;  %v1392_v5 = vsub.f32 %v1384_v61, %v1390_v3  ;;  %v1701_v3 = vld [vmem:[%s2301_s7] ss:$0 sm:$0xff] }
 0xa63   :  { %v1395_v6 = vmul.f32 1.442695, %v1392_v5 }
 0xa64   :  { %v1484_v7 = vpop.permute.xlu1 %1483 }
 0xa65   :  { %1894 = vpow2.f32 %v1395_v6  ;;  %1827 = vmatpush3.msra.mxu1 %v1484_v7 }
 0xa68   :  { %v1562_v21 = vpop.permute.xlu1 %1561 }
 0xa69   :  { %v1583_v24 = vsel %vm221_vm6, %v2173_v34, %v1562_v21 }
 0xa6b   :  { %v1893_v8 = vpop.eup %1892 }
 0xa6c   :  { %v1397_v49 = vsel %vm221_vm6, %v1893_v8, 0.0  ;;  %v1564_v22 = vpop.permute.xlu1 %1563 }
 0xa6d   :  { %1398 = vadd.xlane.f32.xlu0 %v1397_v49  ;;  %v1584_v30 = vsel %vm221_vm6, %v2175_v36, %v1564_v22 }
 0xa6f   :  { %v1895_v9 = vpop.eup %1894 }
 0xa70   :  { %v1400_v10 = vsel %vm221_vm6, %v1895_v9, 0.0  ;;  %v1572_v25 = vpop.permute.xlu1 %1571 }
 0xa71   :  { %1401 = vadd.xlane.f32.xlu0 %v1400_v10  ;;  %v1587_v31 = vsel %vm1585_vm12, %v1584_v30, %v1572_v25 }
 0xa87   :  { %1407 = vrot.lane.b32.xlu0 %v2107_v51, %s1997_s25 }
 0xa8b   :  { %1569 = vrot.lane.b32.xlu0 %v1147_v48, %s1998_s26 }
 0xafa   :  { %v1399_v11 = vpop.xlane.xlu0 %1398 }
 0xafb   :  { %1896 = vrcp.f32 %v1399_v11 }
 0xafe   :  { %v1402_v12 = vpop.xlane.xlu0 %1401 }
 0xaff   :  { %1898 = vrcp.f32 %v1402_v12 }
 0xb02   :  { %v1408_v13 = vpop.permute.xlu0 %1407 }
 0xb03   :  { %1822 = vmatpush3.msra.mxu0 %v1408_v13 }
 0xb05   :  { %v1897_v14 = vpop.eup %1896 }
 0xb06   :  { %v1405_v15 = vmul.f32 %v1897_v14, %v1893_v8  ;;  %v1570_v23 = vpop.permute.xlu0 %1569 }
 0xb07   :  { %v1586_v26 = vsel %vm1585_vm12, %v1583_v24, %v1570_v23 }
 0xb08   :  { %1824 = vmatmul.mubr.msk.f32.vlgmr.msra.gmra.mrb[14].mxu0 %vm221_vm6, %v1405_v15 }
 0xb09   :  { %v1899_v16 = vpop.eup %1898 }
 0xb0a   :  { %v1406_v17 = vmul.f32 %v1899_v16, %v1895_v9 }
 0xb0c   :  { %1829 = vmatmul.mubr.msk.f32.vlgmr.msra.gmra.mrb[16].mxu1 %vm221_vm6, %v1406_v17 }
 0xbdb   :  { %v1479_v18 = vpop.f32.mrb[14].mxu0 }
 0xbdc   :  { %1577 = vrot.lane.b32.xlu0 %v1479_v18, %s1999_s27  ;;  %v1825_v19 = vpop.f32.mrb[15].mxu0 }
 0xbdf   :  { %v1555_v51 = vpop.f32.mrb[16].mxu1 }
 0xbe0   :  { %1579 = vrot.lane.b32.xlu1 %v1555_v51, %s1999_s27  ;;  %v1830_v20 = vpop.f32.mrb[17].mxu1 }
 0xc4e   :  { %v1578_v27 = vpop.permute.xlu0 %1577 }
 0xc4f   :  { %v1589_v28 = vsel %vm1588_vm11, %v1586_v26, %v1578_v27 }
 0xc50   :  { %v1591_v29 = vadd.f32 %v1589_v28, %v2076_v0 }
 0xc52   :  { %v1580_v32 = vpop.permute.xlu1 %1579  ;;  %v1595_v33 = vsel %vm62_vm0, %v1591_v29, 0.0 }
 0xc53   :  { %v1590_v35 = vsel %vm1588_vm11, %v1587_v31, %v1580_v32  ;;  %1596 = vadd.xlane.f32.xlu0 %v1595_v33 }
 0xc54   :  { %v1592_v55 = vadd.f32 %v1590_v35, %v2078_v1 }
 0xc56   :  { %v1598_v34 = vsel %vm62_vm0, %v1592_v55, 0.0 }
 0xc57   :  { %1599 = vadd.xlane.f32.xlu1 %v1598_v34 }
 0xce0   :  { %v1597_v37 = vpop.xlane.xlu0 %1596 }
 0xce1   :  { %v1601_v38 = vmul.f32 0.03125, %v1597_v37 }
 0xce3   :  { %v1603_v39 = vsub.f32 %v1591_v29, %v1601_v38 }
 0xce4   :  { %v1600_v40 = vpop.xlane.xlu1 %1599 }
 0xce5   :  { %v1602_v41 = vmul.f32 0.03125, %v1600_v40  ;;  %v1605_v0 = vmul.f32 %v1603_v39, %v1603_v39 }
 0xce7   :  { %v1604_v42 = vsub.f32 %v1592_v55, %v1602_v41  ;;  %v1607_v36 = vsel %vm62_vm0, %v1605_v0, 0.0 }
 0xce8   :  { %1608 = vadd.xlane.f32.xlu0 %v1607_v36 }
 0xce9   :  { %v1606_v43 = vmul.f32 %v1604_v42, %v1604_v42 }
 0xceb   :  { %v1610_v44 = vsel %vm62_vm0, %v1606_v43, 0.0 }
 0xcec   :  { %1611 = vadd.xlane.f32.xlu0 %v1610_v44 }
 0xd75   :  { %v1609_v45 = vpop.xlane.xlu0 %1608 }
 0xd76   :  { %v1613_v53 = vmul.f32 0.032258064, %v1609_v45 }
 0xd78   :  { %1900 = vrsqrt.f32 %v1613_v53  ;;  %vm1617_vm13 = vcmp.eq.f32.partialorder %v1613_v53, inf  ;;  %v1620_v52 = vand.u32 2147483648, %v1613_v53  ;;  %vm1619_vm14 = vcmp.eq.f32.partialorder %v1613_v53, 0.0 }
 0xd79   :  { %v1612_v1 = vpop.xlane.xlu0 %1611 }
 0xd7a   :  { %v1614_v47 = vmul.f32 0.032258064, %v1612_v1 }
 0xd7c   :  { %1902 = vrsqrt.f32 %v1614_v47  ;;  %vm1624_vm15 = vcmp.eq.f32.partialorder %v1614_v47, inf  ;;  %v1627_v60 = vand.u32 2147483648, %v1614_v47  ;;  %vm1626_vm1 = vcmp.eq.f32.partialorder %v1614_v47, 0.0 }
 0xd82   :  { %v1901_v48 = vpop.eup %1900 }
 0xd83   :  { %v1616_v50 = vmul.f32 %v1901_v48, %v1613_v53 }
 0xd85   :  { %v1618_v54 = vsel %vm1617_vm13, %v1613_v53, %v1616_v50 }
 0xd86   :  { %v1903_v56 = vpop.eup %1902  ;;  %v1621_v57 = vsel %vm1619_vm14, %v1620_v52, %v1618_v54 }
 0xd87   :  { %v1629_v58 = vadd.f32 1e-06, %v1621_v57  ;;  %v1623_v59 = vmul.f32 %v1903_v56, %v1614_v47 }
 0xd89   :  { %1904 = vrcp.f32 %v1629_v58  ;;  %v1625_v61 = vsel %vm1624_vm15, %v1614_v47, %v1623_v59 }
 0xd8a   :  { %v1628_v62 = vsel %vm1626_vm1, %v1627_v60, %v1625_v61 }
 0xd8b   :  { %v1630_v2 = vadd.f32 1e-06, %v1628_v62 }
 0xd8d   :  { %1906 = vrcp.f32 %v1630_v2 }
 0xd93   :  { %v1905_v46 = vpop.eup %1904 }
 0xd94   :  { %v1633_v4 = vmul.f32 %v1905_v46, %v1603_v39 }
 0xd96   :  { %v1641_v5 = vmul.f32 %v1700_v63, %v1633_v4 }
 0xd97   :  { %v1907_v6 = vpop.eup %1906 }
 0xd98   :  { %v1634_v7 = vmul.f32 %v1907_v6, %v1604_v42  ;;  %v1649_v8 = vadd.f32 %v1701_v3, %v1641_v5 }
 0xd9a   :  { %v1642_v49 = vmul.f32 %v1700_v63, %v1634_v7  ;;  %1651 = vst.msk [vmem:[#allocation7] sm:$0xff] %vm62_vm0, %v1649_v8 }
 0xd9c   :  { %v1650_v9 = vadd.f32 %v1701_v3, %v1642_v49 }
 0xd9e   :  { %1652 = vst.msk [vmem:[#allocation7 + $0x8] sm:$0xff] %vm62_vm0, %v1650_v9 }
 0xd9f   :  { %1963 = shalt.err (!%p1960_p6)
}
 0xda0   :  { %s1964_s4 = scalar_lea.hbm %s2302_s8, 256 }
 0xda1   :  { %p1965_p7 = scmp.ne.s32.totalorder %s2302_s8, %s1964_s4  ;;  %p1968_p8 = scmp.lt.u32.totalorder %s1964_s4, %s2302_s8 }
 0xda3   :  { %p1970_p9 = pnand %p1968_p8, %p1965_p7 }
 0xda5   :  { %1973 = shalt.err (!%p1970_p9)
}
 0xda6   :  { %1664 = dma.vmem_to_hbm [thread:$0]  %s1659_s9, 256, %s2302_s8, [#allocation4], %s1981_s15, %s1981_s15, %s1982_s16  }
 0xda7   :  { %1978 = dma.done.wait [#allocation4], 256  }
 0xda8   :  { %1979 = vsyncadd [#allocation4], 4294967040 }
 0xda9   :  { %1668 = vsyncpa [#allocation3], 1 }
 0xdaa   :  { %1669 = vsyncpa [#allocation6], 1 }
 0xdab   :  { %1670 = vsyncpa [#allocation4], 1 }

</bundles_post_ra>
